<compile_context>
chip_gen: v6e
topology: v6e:2x2x1
jax: 0.10.0
libtpu: 0.0.40
codegen_flags: <defaults>
</compile_context>

<pallas_src>
import functools

import numpy as np
import jax
import jax.numpy as jnp
from jax.experimental import pallas as pl
from jax.experimental.pallas import tpu as pltpu


# ---------------------------------------------------------------------------
# Per-generation planning + tiling utilities
# ---------------------------------------------------------------------------
def _vmem_plan():
    """Returns (target_block_bytes, vmem_limit_bytes) sized per TPU generation."""
    try:
        vmem_bytes = pltpu.get_tpu_info().vmem_capacity_bytes
    except Exception:
        vmem_bytes = 0
    if vmem_bytes >= (96 << 20):          # v5e / v6e: 128 MiB physical VMEM
        return 8 << 20, 64 << 20
    if vmem_bytes > 0:                    # v7x: 64 MiB per TensorCore
        return 4 << 20, 40 << 20
    return 4 << 20, 32 << 20              # unknown: conservative


def _lane_tile(L, cap_bytes, itemsize):
    """Lane-dense tile: multiple of 128 not exceeding L, or full L if L<128."""
    if L <= 128:
        return L
    cap = max(128, (cap_bytes // itemsize // 128) * 128)
    return min((L // 128) * 128, cap)


def _row_tile(R, quantum, cap_rows):
    """Row tile: multiple of the sublane quantum (or full R when R<=quantum)."""
    if R <= quantum:
        return R
    cap = max(quantum, (cap_rows // quantum) * quantum)
    return min((R // quantum) * quantum, cap)


def _sublane_quantum(itemsize):
    return {4: 8, 2: 16, 1: 32}.get(itemsize, 8)


# ---------------------------------------------------------------------------
# Kernel 1: per-row streaming reduction for data-dependent init.
#   Produces row_sum, row_sq of shape (R, 1) = (N*C, 1); the tiny per-channel
#   combine (mean / var / log) happens in plain jnp outside the kernel.
# ---------------------------------------------------------------------------
def _actnorm_rowstat_kernel(x_ref, sum_ref, sq_ref, *, L, tl):
    j = pl.program_id(1)                       # lane-tile index (reduction axis)

    @pl.when(j == 0)
    def _():
        sum_ref[...] = jnp.zeros_like(sum_ref)
        sq_ref[...] = jnp.zeros_like(sq_ref)

    x = x_ref[...].astype(jnp.float32)         # (tr, tl)
    rem = L % tl                               # static

    if rem == 0:
        sum_ref[...] += jnp.sum(x, axis=1, keepdims=True)
        sq_ref[...] += jnp.sum(x * x, axis=1, keepdims=True)
    else:
        last = pl.num_programs(1) - 1

        @pl.when(j < last)
        def _():
            sum_ref[...] += jnp.sum(x, axis=1, keepdims=True)
            sq_ref[...] += jnp.sum(x * x, axis=1, keepdims=True)

        @pl.when(j == last)
        def _():
            # OOB input reads are undefined garbage -> mask the ragged lanes.
            lane = jax.lax.broadcasted_iota(jnp.int32, x.shape, 1)
            xm = jnp.where(lane < rem, x, 0.0)
            sum_ref[...] += jnp.sum(xm, axis=1, keepdims=True)
            sq_ref[...] += jnp.sum(xm * xm, axis=1, keepdims=True)


def actnorm_init_params(x, scale=1.0):
    """x: (N, C, H, W).  Returns (bias, logs), each float32 of shape (C,)."""
    N, C, H, W = x.shape
    L = H * W
    R = N * C
    x2 = x.reshape(R, L)                       # free reshape, no transpose

    target_block_bytes, vmem_limit = _vmem_plan()
    itemsize = x2.dtype.itemsize
    sub_q = _sublane_quantum(itemsize)
    tl = _lane_tile(L, max(128 * itemsize, target_block_bytes // sub_q), itemsize)
    tr = _row_tile(R, sub_q, max(sub_q, target_block_bytes // (tl * itemsize)))
    grid = (pl.cdiv(R, tr), pl.cdiv(L, tl))

    kernel = functools.partial(_actnorm_rowstat_kernel, L=L, tl=tl)
    row_sum, row_sq = pl.pallas_call(
        kernel,
        out_shape=(jax.ShapeDtypeStruct((R, 1), jnp.float32),
                   jax.ShapeDtypeStruct((R, 1), jnp.float32)),
        grid=grid,
        in_specs=[pl.BlockSpec((tr, tl), lambda i, j: (i, j))],
        out_specs=(pl.BlockSpec((tr, 1), lambda i, j: (i, 0)),
                   pl.BlockSpec((tr, 1), lambda i, j: (i, 0))),
        compiler_params=pltpu.CompilerParams(
            dimension_semantics=("parallel", "arbitrary"),
            vmem_limit_bytes=vmem_limit),
    )(x2)

    # Tiny (N, C) -> (C) combine + mean/var/log finish in plain jnp.
    n_elems = jnp.float32(N * H * W)
    ch_sum = row_sum.reshape(N, C).sum(axis=0)
    ch_sq = row_sq.reshape(N, C).sum(axis=0)
    mean = ch_sum / n_elems
    # TODO(synk): single-pass var = E[x^2] - mean^2 in f32; reference is
    # two-pass mean((x+bias)^2) — consider two passes for |mean| >> std.
    var = jnp.maximum(ch_sq / n_elems - mean * mean, 0.0)
    bias = -mean
    logs = jnp.log(jnp.float32(scale) / (jnp.sqrt(var) + 1e-6))
    return bias, logs


# ---------------------------------------------------------------------------
# Kernel 2: the actnorm elementwise hot path on the native (N*C, H*W) layout.
#   forward:  y = (x + shift) * scale        (shift = bias,  scale = exp(logs))
#   reverse:  y =  x * scale + shift         (shift = -bias, scale = exp(-logs))
# Params are packed into a single (R, 2) f32 array: [:, 0]=shift, [:, 1]=scale.
# ---------------------------------------------------------------------------
def _actnorm_apply_kernel(x_ref, p_ref, y_ref, *, reverse):
    x = x_ref[...].astype(jnp.float32)         # (tr, tl)
    shift = p_ref[:, 0:1]                      # (tr, 1) float32
    scale = p_ref[:, 1:2]                      # (tr, 1) float32
    if reverse:
        y = x * scale + shift
    else:
        y = (x + shift) * scale
    y_ref[...] = y.astype(y_ref.dtype)


def actnorm_apply(x2, params_rows, *, reverse=False):
    """x2: (R, L); params_rows: (R, 2) float32 [shift, scale]. Returns (R, L)."""
    R, L = x2.shape
    target_block_bytes, vmem_limit = _vmem_plan()
    itemsize = x2.dtype.itemsize
    sub_q = _sublane_quantum(itemsize)
    tl = _lane_tile(L, max(128 * itemsize, target_block_bytes // sub_q), itemsize)
    tr = _row_tile(R, sub_q, max(sub_q, target_block_bytes // (tl * itemsize)))
    grid = (pl.cdiv(R, tr), pl.cdiv(L, tl))

    kernel = functools.partial(_actnorm_apply_kernel, reverse=reverse)
    # Ragged last blocks: OOB reads are harmless garbage (elementwise math,
    # per-lane independent) because the matching OOB writes are dropped.
    return pl.pallas_call(
        kernel,
        out_shape=jax.ShapeDtypeStruct((R, L), x2.dtype),
        grid=grid,
        in_specs=[pl.BlockSpec((tr, tl), lambda i, j: (i, j)),
                  pl.BlockSpec((tr, 2), lambda i, j: (i, 0))],
        out_specs=pl.BlockSpec((tr, tl), lambda i, j: (i, j)),
        compiler_params=pltpu.CompilerParams(
            dimension_semantics=("parallel", "parallel"),
            vmem_limit_bytes=vmem_limit),
    )(x2, params_rows)


# ---------------------------------------------------------------------------
# Python-side module mirroring _ActNorm semantics
# ---------------------------------------------------------------------------
class ActNorm2d:
    def __init__(self, num_features, scale=1.0):
        self.num_features = num_features
        self.scale = float(scale)
        # Parameters shaped like the PyTorch module: [1, C, 1, 1], zeros.
        self.bias = jnp.zeros((1, num_features, 1, 1), jnp.float32)
        self.logs = jnp.zeros((1, num_features, 1, 1), jnp.float32)
        self.inited = False
        self.training = True

    def initialize_parameters(self, x):
        if not self.training:
            return
        if bool(jnp.any(self.bias != 0)):      # one-time host sync, like the reference
            self.inited = True
            return
        bias, logs = actnorm_init_params(x, self.scale)
        self.bias = bias.reshape(1, self.num_features, 1, 1)
        self.logs = logs.reshape(1, self.num_features, 1, 1)
        self.inited = True

    def __call__(self, x, logdet=None, reverse=False, offset_mask=None,
                 logs_offset=None, bias_offset=None):
        if not self.inited:
            self.initialize_parameters(x)
        N, C, H, W = x.shape
        assert C == self.num_features

        if offset_mask is not None:
            logs_offset = logs_offset * offset_mask
            bias_offset = bias_offset * offset_mask

        bias = self.bias
        logs = self.logs
        if bias_offset is not None:
            bias = bias + bias_offset
        if logs_offset is not None:
            logs = logs + logs_offset
        # TODO(synk): only per-channel [1,C,1,1]-shaped offsets are supported here.
        assert bias.size == C and logs.size == C, \
            "only per-channel [1,C,1,1] offsets are supported"

        # Parameter math (exp, negation) stays in float32; the kernel only
        # casts the final store to x.dtype.
        bias_c = bias.reshape(C).astype(jnp.float32)
        logs_c = logs.reshape(C).astype(jnp.float32)
        if not reverse:
            shift_c = bias_c
            scale_c = jnp.exp(logs_c)
        else:
            shift_c = -bias_c
            scale_c = jnp.exp(-logs_c)

        R = N * C
        # Row r of x.reshape(R, H*W) is channel r % C -> tile across batch.
        params_rows = jnp.stack(
            [jnp.tile(shift_c, N), jnp.tile(scale_c, N)], axis=1)   # (R, 2) f32

        x2 = x.reshape(R, H * W)               # free reshape, no transpose
        y2 = actnorm_apply(x2, params_rows, reverse=reverse)
        y = y2.reshape(N, C, H, W)

        if logdet is not None:
            dlogdet = jnp.sum(logs) * float(H * W)   # sum(logs) * pixels
            if reverse:
                dlogdet = -dlogdet
            logdet = logdet + dlogdet
        return y, logdet


# ---------------------------------------------------------------------------
if __name__ == "__main__":
    key = jax.random.PRNGKey(0)
    N, C, H, W = 2, 4, 16, 16
    # Non-trivial mean / std so the data-dependent init actually does something.
    x = 2.0 * jax.random.normal(key, (N, C, H, W), dtype=jnp.float32) + 1.5

    model = ActNorm2d(num_features=C, scale=1.0)
    logdet0 = jnp.zeros((), jnp.float32)

    y, logdet = model(x, logdet=logdet0, reverse=False)
    y = jax.block_until_ready(y)
    logdet = jax.block_until_ready(logdet)

    # Reference check (pure numpy, mirroring the PyTorch math).
    xn = np.asarray(x)
    mean = xn.mean(axis=(0, 2, 3), keepdims=True)
    bias_ref = -mean
    var = ((xn + bias_ref) ** 2).mean(axis=(0, 2, 3), keepdims=True)
    logs_ref = np.log(1.0 / (np.sqrt(var) + 1e-6))
    y_ref = (xn + bias_ref) * np.exp(logs_ref)
    logdet_ref = logs_ref.sum() * (H * W)

    assert np.allclose(np.asarray(y), y_ref, atol=1e-3, rtol=1e-3)
    assert np.allclose(np.asarray(logdet), logdet_ref, atol=1e-2, rtol=1e-3)

    # Round-trip (reverse pass) sanity check.
    x_rec, logdet_rt = model(y, logdet=logdet, reverse=True)
    x_rec = jax.block_until_ready(x_rec)
    assert np.allclose(np.asarray(x_rec), xn, atol=1e-3, rtol=1e-3)
    assert np.allclose(np.asarray(logdet_rt), 0.0, atol=1e-2)

    # Ragged-shape sanity check (H*W % 128 != 0, N*C % 8 != 0): exercises the
    # cdiv grids, dropped OOB writes and the masked edge tile in the init path.
    N2, C2, H2, W2 = 3, 3, 10, 13
    x_r = 0.7 * jax.random.normal(jax.random.PRNGKey(1), (N2, C2, H2, W2),
                                  dtype=jnp.float32) - 0.3
    model_r = ActNorm2d(num_features=C2, scale=1.0)
    y_r, _ = model_r(x_r, logdet=None, reverse=False)
    y_r = jax.block_until_ready(y_r)
    xr = np.asarray(x_r)
    mean_r = xr.mean(axis=(0, 2, 3), keepdims=True)
    var_r = ((xr - mean_r) ** 2).mean(axis=(0, 2, 3), keepdims=True)
    y_r_ref = (xr - mean_r) * np.exp(np.log(1.0 / (np.sqrt(var_r) + 1e-6)))
    assert np.allclose(np.asarray(y_r), y_r_ref, atol=1e-3, rtol=1e-3)

    print("KERNEL_OK")
</pallas_src>

<mosaic_0001>
module attributes {stable_mosaic.version = 11 : i64} {
  func.func @_actnorm_rowstat_kernel(%arg0: i32, %arg1: i32, %arg2: memref<8x256xf32, #tpu.memory_space<vmem>>, %arg3: memref<8x1xf32, #tpu.memory_space<vmem>>, %arg4: memref<8x1xf32, #tpu.memory_space<vmem>>) attributes {dimension_semantics = [#tpu.dimension_semantics<parallel>, #tpu.dimension_semantics<arbitrary>], iteration_bounds = array<i64: 1, 1>, scalar_prefetch = 0 : i64, scratch_operands = 0 : i64, tpu.core_type = #tpu.core_type<tc>, window_params = [{transform_indices = @transform_0, window_bounds = array<i64: 8, 256>}, {transform_indices = @transform_1, window_bounds = array<i64: 8, 1>}, {transform_indices = @transform_2, window_bounds = array<i64: 8, 1>}]} {
    %c0_i32 = arith.constant 0 : i32
    %0 = arith.cmpi eq, %arg1, %c0_i32 : i32
    %1 = arith.extui %0 : i1 to i32
    %c0_i32_0 = arith.constant 0 : i32
    %2 = arith.cmpi ne, %1, %c0_i32_0 : i32
    scf.if %2 {
      %cst_11 = arith.constant 0.000000e+00 : f32
      %15 = vector.broadcast %cst_11 : f32 to vector<8x1xf32>
      %c0_12 = arith.constant 0 : index
      %c0_13 = arith.constant 0 : index
      %16 = vector.load %arg3[%c0_12, %c0_13] : memref<8x1xf32, #tpu.memory_space<vmem>>, vector<8x1xf32>
      tpu.vector_store %arg3[%c0_12, %c0_13], %15 {strides = array<i32>} : memref<8x1xf32, #tpu.memory_space<vmem>>, vector<8x1xf32>,
      %cst_14 = arith.constant 0.000000e+00 : f32
      %17 = vector.broadcast %cst_14 : f32 to vector<8x1xf32>
      %c0_15 = arith.constant 0 : index
      %c0_16 = arith.constant 0 : index
      %18 = vector.load %arg4[%c0_15, %c0_16] : memref<8x1xf32, #tpu.memory_space<vmem>>, vector<8x1xf32>
      tpu.vector_store %arg4[%c0_15, %c0_16], %17 {strides = array<i32>} : memref<8x1xf32, #tpu.memory_space<vmem>>, vector<8x1xf32>,
    } else {
    }
    %c0 = arith.constant 0 : index
    %c0_1 = arith.constant 0 : index
    %3 = vector.load %arg2[%c0, %c0_1] : memref<8x256xf32, #tpu.memory_space<vmem>>, vector<8x256xf32>
    %c0_2 = arith.constant 0 : index
    %c0_3 = arith.constant 0 : index
    %4 = vector.load %arg3[%c0_2, %c0_3] : memref<8x1xf32, #tpu.memory_space<vmem>>, vector<8x1xf32>
    %cst = arith.constant dense<0.000000e+00> : vector<8xf32>
    %5 = vector.multi_reduction <add>, %3, %cst [1] : vector<8x256xf32> to vector<8xf32>
    %6 = vector.shape_cast %5 : vector<8xf32> to vector<8x1xf32>
    %7 = arith.addf %4, %6 : vector<8x1xf32>
    %c0_4 = arith.constant 0 : index
    %c0_5 = arith.constant 0 : index
    %8 = vector.load %arg3[%c0_4, %c0_5] : memref<8x1xf32, #tpu.memory_space<vmem>>, vector<8x1xf32>
    tpu.vector_store %arg3[%c0_4, %c0_5], %7 {strides = array<i32>} : memref<8x1xf32, #tpu.memory_space<vmem>>, vector<8x1xf32>,
    %c0_6 = arith.constant 0 : index
    %c0_7 = arith.constant 0 : index
    %9 = vector.load %arg4[%c0_6, %c0_7] : memref<8x1xf32, #tpu.memory_space<vmem>>, vector<8x1xf32>
    %10 = arith.mulf %3, %3 : vector<8x256xf32>
    %cst_8 = arith.constant dense<0.000000e+00> : vector<8xf32>
    %11 = vector.multi_reduction <add>, %10, %cst_8 [1] : vector<8x256xf32> to vector<8xf32>
    %12 = vector.shape_cast %11 : vector<8xf32> to vector<8x1xf32>
    %13 = arith.addf %9, %12 : vector<8x1xf32>
    %c0_9 = arith.constant 0 : index
    %c0_10 = arith.constant 0 : index
    %14 = vector.load %arg4[%c0_9, %c0_10] : memref<8x1xf32, #tpu.memory_space<vmem>>, vector<8x1xf32>
    tpu.vector_store %arg4[%c0_9, %c0_10], %13 {strides = array<i32>} : memref<8x1xf32, #tpu.memory_space<vmem>>, vector<8x1xf32>,
    return
  }
  func.func @transform_0(%arg0: i32, %arg1: i32) -> (i32, i32) {
    %c0_i32 = arith.constant 0 : i32
    return %arg0, %arg1 : i32, i32
  }
  func.func @transform_1(%arg0: i32, %arg1: i32) -> (i32, i32) {
    %c0_i32 = arith.constant 0 : i32
    %c0_i32_0 = arith.constant 0 : i32
    return %arg0, %c0_i32 : i32, i32
  }
  func.func @transform_2(%arg0: i32, %arg1: i32) -> (i32, i32) {
    %c0_i32 = arith.constant 0 : i32
    %c0_i32_0 = arith.constant 0 : i32
    return %arg0, %c0_i32 : i32, i32
  }
}

</mosaic_0001>

<bundles_post_ra>
// kernel: tpu_custom_call.1
= control target key start
LH: loop header
LB: loop body
LE: loop exit
PB: predicated region body
PF: predicated region fallthrough
CT: control target
= control target key end

     0   :  { %8 = vsyncpa [#allocation3], 0  ;;  %s79_s9 = smov [#allocation2]   ;;  %s121_s0 = inlined_call_operand.hbm [shape: f32[8,256], index: 0, kind: input, shape index: {}]   ;;  %s122_s1 = inlined_call_operand.vmem [shape: f32[8,1], index: 1, kind: output, shape index: {0}]   ;;  %s123_s2 = inlined_call_operand.vmem [shape: f32[8,1], index: 2, kind: output, shape index: {1}]  }
   0x1   :  { %s15_s10 = sshll.u32 %s79_s9, 4  ;;  %s16_s10 = int_to_ptr.vmem [resolvable:$true] %s15_s10 }
   0x2   :  { %s65_s11 = scalar_lea.vmem %s16_s10, 256  ;;  %p70_p1 = scmp.lt.s32.totalorder %s16_s10, %s16_s10 }
   0x3   :  { %p66_p0 = scmp.ne.s32.totalorder %s16_s10, %s65_s11  ;;  %p71_p2 = scmp.lt.s32.totalorder %s65_s11, %s65_s11 }
   0x5   :  { %p72_p3 = por %p71_p2, %p70_p1 }
   0x7   :  { %p73_p4 = pnand %p72_p3, %p66_p0 }
   0x9   :  { %76 = shalt.err (!%p73_p4)
}
   0xa   :  { %18 = dma.hbm_to_vmem [thread:$0]  %s121_s0, 256, %s16_s10, [#allocation3]  }
   0xb   :  { %77 = dma.done.wait [#allocation3], 256  }
   0xc   :  { %78 = vsyncadd [#allocation3], 4294967040  ;;  %vm26_vm0 = vcmask 7168   ;;  %v80_v0 = vmov 0.0   ;;  %v29_v1 = vld [vmem:[#allocation2] sm:$0xff]  ;;  %v30_v2 = vld [vmem:[#allocation2 + $0x8] sm:$0xff] }
   0xd   :  { %27 = vst.msk [vmem:[%s122_s1] sm:$0xff] %vm26_vm0, %v80_v0  ;;  %28 = vst.msk [vmem:[%s123_s2] sm:$0xff] %vm26_vm0, %v80_v0  ;;  %v32_v3 = vadd.f32 %v30_v2, %v29_v1  ;;  %v39_v4 = vmul.f32 %v29_v1, %v29_v1  ;;  %v40_v5 = vmul.f32 %v30_v2, %v30_v2 }
   0xf   :  { %33 = vadd.xlane.f32.xlu0 %v32_v3  ;;  %v41_v6 = vadd.f32 %v40_v5, %v39_v4 }
  0x13   :  { %42 = vadd.xlane.f32.xlu0 %v41_v6 }
  0x14   :  { %v31_v7 = vld [vmem:[%s122_s1] sm:$0xff] }
  0x15   :  { %v38_v10 = vld [vmem:[%s123_s2] sm:$0xff] }
  0x98   :  { %v34_v8 = vpop.xlane.xlu0 %33 }
  0x99   :  { %v35_v9 = vadd.f32 %v34_v8, %v31_v7 }
  0x9b   :  { %37 = vst.msk [vmem:[%s122_s1] sm:$0xff] %vm26_vm0, %v35_v9 }
  0x9c   :  { %v43_v11 = vpop.xlane.xlu0 %42 }
  0x9d   :  { %v44_v12 = vadd.f32 %v43_v11, %v38_v10 }
  0x9f   :  { %45 = vst.msk [vmem:[%s123_s2] sm:$0xff] %vm26_vm0, %v44_v12 }
  0xa0   :  { %54 = vsyncpa [#allocation3], 1 }

</bundles_post_ra>
